<compile_context>
chip_gen: v7x
topology: tpu7x:2x2x1
jax: 0.10.0
libtpu: 0.0.40
codegen_flags: <defaults>
</compile_context>

<pallas_src>
import functools

import jax
import jax.numpy as jnp
from jax import lax
from jax.experimental import pallas as pl
from jax.experimental.pallas import tpu as pltpu

_LANES = 128


def _round_up(n: int, m: int) -> int:
    return ((n + m - 1) // m) * m


def _cdiv(n: int, m: int) -> int:
    return (n + m - 1) // m


def _vmem_capacity_bytes() -> int:
    try:
        return int(pltpu.get_tpu_info().vmem_capacity_bytes)
    except Exception:
        return 32 * 1024 * 1024  # conservative fallback


def small_mlp_kernel(x_ref, w1_ref, b1_ref, w2_ref, b2_ref, out_ref):
    """One batch tile of out = relu(x @ W1 + b1) @ w2 + b2, lane-dense output.

    x_ref  : (TB, D)   activations (bf16 or f32)
    w1_ref : (D, Hp)   fc1 weight, hidden padded to 128 lanes (VMEM-resident)
    b1_ref : (1, Hp)   fc1 bias row, f32 (VMEM-resident)
    w2_ref : (1, Hp)   fc2 weight row, f32 (zero-padded, VMEM-resident)
    b2_ref : (1,)      fc2 bias scalar in SMEM
    out_ref: (1, TB)   one scalar per batch row, batch on the lane axis, f32
    """
    # fc1 on the MXU with f32 accumulation (bf16 or f32 operands).
    h = jnp.dot(x_ref[...], w1_ref[...], preferred_element_type=jnp.float32)   # (TB, Hp)
    h = jnp.maximum(h + b1_ref[...], 0.0)                                      # VPU

    # fc2 (Hp -> 1) as a single M=1 MXU contraction: (1,Hp) x (TB,Hp)^T -> (1,TB).
    # Rides the under-used MXU slot and keeps batch on lanes (no XLU transpose
    # + sublane reduce, no masked stores).
    o = lax.dot_general(w2_ref[...], h,
                        dimension_numbers=(((1,), (1,)), ((), ())),
                        preferred_element_type=jnp.float32)                    # (1, TB)
    out_ref[...] = (o + b2_ref[0]).astype(out_ref.dtype)


def prepare_small_mlp_params(w1, b1, w2, b2, compute_dtype=jnp.bfloat16):
    """One-time weight re-layout (model init, not per forward).

    w1: (D, H) fc1 weight stored [in_features, out_features]; b1: (H,);
    w2: (H, 1); b2: (1,).
    """
    D, H = w1.shape
    Hp = _round_up(H, _LANES)                                             # lane-dense hidden
    w1p = jnp.pad(w1, ((0, 0), (0, Hp - H))).astype(compute_dtype)        # (D, Hp)
    b1p = jnp.pad(b1, (0, Hp - H)).reshape(1, Hp).astype(jnp.float32)     # (1, Hp)
    w2p = jnp.pad(w2[:, 0], (0, Hp - H)).reshape(1, Hp).astype(jnp.float32)
    b2s = b2.reshape(1).astype(jnp.float32)                               # (1,) -> SMEM
    return w1p, b1p, w2p, b2s


def small_mlp_forward(x, params):
    """x: (B, D) float array; params from prepare_small_mlp_params. Returns (B,) f32."""
    w1p, b1p, w2p, b2s = params
    B, D = x.shape
    Hp = w1p.shape[1]
    compute_dtype = w1p.dtype
    xc = x.astype(compute_dtype)                  # bf16 halves HBM traffic of x
    in_itemsize = jnp.dtype(compute_dtype).itemsize

    # ---- VMEM-aware batch-tile selection ----------------------------------
    vmem_cap = _vmem_capacity_bytes()
    tb_cap = 2048 if vmem_cap >= (96 << 20) else 1024    # big tiles v5e/v6e, smaller v7x
    budget = min(int(0.45 * vmem_cap), 48 << 20)

    def footprint(tb):
        return (2 * tb * D * in_itemsize          # x tile, double-buffered
                + D * Hp * in_itemsize            # W1, single-buffered (resident)
                + 2 * Hp * 4                      # b1 + w2 rows
                + 2 * 2 * tb * 4)                 # (1, TB) f32 output, double-buffered

    TB = min(tb_cap, _round_up(max(B, 1), _LANES))
    while TB > _LANES and footprint(TB) > budget:
        TB = max(_LANES, _round_up(TB // 2, _LANES))

    # Guarantee >= 2 grid steps for medium batches so the "parallel" batch axis
    # can shard across both v7x TensorCores; negligible overhead on v5e/v6e.
    if _cdiv(B, TB) < 2 and B > _LANES:
        TB = max(_LANES, _round_up(_cdiv(B, 2), _LANES))

    num_tiles = _cdiv(B, TB)
    Bp = num_tiles * TB

    # Raise the scoped VMEM limit explicitly (defaults: 16 MiB v5e / 32 MiB v6e,v7x).
    vmem_limit = max(32 << 20, min(int(0.85 * vmem_cap), 2 * footprint(TB) + (4 << 20)))

    cost = pl.CostEstimate(
        flops=2 * Bp * D * Hp + 4 * Bp * Hp,
        transcendentals=0,
        bytes_accessed=B * D * in_itemsize + D * Hp * in_itemsize
        + 2 * Hp * 4 + 4 + Bp * 4,
    )

    # Constant-index, VMEM-resident blocks: single buffer (no unused 2nd copy).
    resident = functools.partial(pl.BlockSpec, pipeline_mode=pl.Buffered(buffer_count=1))

    out = pl.pallas_call(
        small_mlp_kernel,
        out_shape=jax.ShapeDtypeStruct((1, Bp), jnp.float32),     # tiny; keep f32 output
        grid=(num_tiles,),
        in_specs=[
            # x: batch-tiled, NO host-side pad; partial last tile reads past B and
            # the garbage rows are discarded by the out[0, :B] slice below.
            pl.BlockSpec((TB, D), lambda i: (i, 0)),
            resident((D, Hp), lambda i: (0, 0)),                  # W1: resident
            resident((1, Hp), lambda i: (0, 0)),                  # b1: resident
            resident((1, Hp), lambda i: (0, 0)),                  # w2 row: resident
            pl.BlockSpec(memory_space=pltpu.MemorySpace.SMEM),    # b2 scalar
        ],
        out_specs=pl.BlockSpec((1, TB), lambda i: (0, i)),        # lane-dense out
        compiler_params=pltpu.CompilerParams(
            dimension_semantics=("parallel",),                    # megacore (v7x)
            vmem_limit_bytes=vmem_limit,
        ),
        cost_estimate=cost,
    )(xc, w1p, b1p, w2p, b2s)

    # squeeze(-1) from the PyTorch forward + drop batch padding (free glue).
    return out[0, :B]


if __name__ == "__main__":
    key = jax.random.PRNGKey(0)
    k_x, k_w1, k_b1, k_w2, k_b2 = jax.random.split(key, 5)

    batch = 8
    input_dim = 32
    hidden_dim = 16

    # Deterministic synthetic parameters (shapes from SmallMLP.__init__),
    # stored as [in_features, out_features] for the kernel.
    x = jax.random.normal(k_x, (batch, input_dim), dtype=jnp.float32)
    w1 = jax.random.normal(k_w1, (input_dim, hidden_dim), dtype=jnp.float32) * 0.1
    b1 = jax.random.normal(k_b1, (hidden_dim,), dtype=jnp.float32) * 0.1
    w2 = jax.random.normal(k_w2, (hidden_dim, 1), dtype=jnp.float32) * 0.1
    b2 = jax.random.normal(k_b2, (1,), dtype=jnp.float32) * 0.1

    # Pure-JAX reference of the same math (fp32, matches the PyTorch module).
    ref = (jnp.maximum(x @ w1 + b1, 0.0) @ w2 + b2)[:, 0]

    # f32 path: exact check against the fp32 reference.
    params_f32 = prepare_small_mlp_params(w1, b1, w2, b2, compute_dtype=jnp.float32)
    out_f32 = jax.block_until_ready(small_mlp_forward(x, params_f32))
    assert out_f32.shape == (batch,)
    assert jnp.allclose(out_f32, ref, atol=1e-5, rtol=1e-5)

    # bf16 fast path (default): halved HBM traffic, f32 accumulation + f32 output.
    params_bf16 = prepare_small_mlp_params(w1, b1, w2, b2)
    out_bf16 = jax.block_until_ready(small_mlp_forward(x, params_bf16))
    assert out_bf16.shape == (batch,) and out_bf16.dtype == jnp.float32
    assert jnp.allclose(out_bf16, ref, atol=5e-2, rtol=5e-2)

    print("KERNEL_OK")
</pallas_src>

<mosaic_0001>
module attributes {stable_mosaic.version = 11 : i64} {
  func.func @small_mlp_kernel(%arg0: i32, %arg1: memref<128x32xf32, #tpu.memory_space<vmem>>, %arg2: memref<32x128xf32, #tpu.memory_space<vmem>>, %arg3: memref<1x128xf32, #tpu.memory_space<vmem>>, %arg4: memref<1x128xf32, #tpu.memory_space<vmem>>, %arg5: memref<1xf32, #tpu.memory_space<smem>>, %arg6: memref<1x128xf32, #tpu.memory_space<vmem>>) attributes {dimension_semantics = [#tpu.dimension_semantics<parallel>], iteration_bounds = array<i64: 1>, scalar_prefetch = 0 : i64, scratch_operands = 0 : i64, tpu.core_type = #tpu.core_type<tc>, window_params = [{transform_indices = @transform_0, window_bounds = array<i64: 128, 32>}, {pipeline_mode = #tpu.pipeline_mode<synchronous>, transform_indices = @transform_1, window_bounds = array<i64: 32, 128>}, {pipeline_mode = #tpu.pipeline_mode<synchronous>, transform_indices = @transform_2, window_bounds = array<i64: 1, 128>}, {pipeline_mode = #tpu.pipeline_mode<synchronous>, transform_indices = @transform_3, window_bounds = array<i64: 1, 128>}, {transform_indices = @transform_4, window_bounds = array<i64: 1>}, {transform_indices = @transform_5, window_bounds = array<i64: 1, 128>}]} {
    %c0 = arith.constant 0 : index
    %c0_0 = arith.constant 0 : index
    %0 = vector.load %arg1[%c0, %c0_0] : memref<128x32xf32, #tpu.memory_space<vmem>>, vector<128x32xf32>
    %c0_1 = arith.constant 0 : index
    %c0_2 = arith.constant 0 : index
    %1 = vector.load %arg2[%c0_1, %c0_2] : memref<32x128xf32, #tpu.memory_space<vmem>>, vector<32x128xf32>
    %cst = arith.constant dense<0.000000e+00> : vector<128x128xf32>
    %2 = tpu.matmul %0, %1, %cst {dimension_numbers = #tpu.dot_dimension_numbers<[1], [0], [0], [1], [0, 0, 1, 1], [], []>} : vector<128x32xf32>, vector<32x128xf32>, vector<128x128xf32> -> vector<128x128xf32>
    %c0_3 = arith.constant 0 : index
    %c0_4 = arith.constant 0 : index
    %3 = vector.load %arg3[%c0_3, %c0_4] : memref<1x128xf32, #tpu.memory_space<vmem>>, vector<1x128xf32>
    %4 = vector.broadcast %3 : vector<1x128xf32> to vector<128x128xf32>
    %5 = arith.addf %2, %4 : vector<128x128xf32>
    %cst_5 = arith.constant 0.000000e+00 : f32
    %6 = vector.broadcast %cst_5 : f32 to vector<128x128xf32>
    %7 = arith.maximumf %5, %6 : vector<128x128xf32>
    %c0_6 = arith.constant 0 : index
    %c0_7 = arith.constant 0 : index
    %8 = vector.load %arg4[%c0_6, %c0_7] : memref<1x128xf32, #tpu.memory_space<vmem>>, vector<1x128xf32>
    %cst_8 = arith.constant dense<0.000000e+00> : vector<1x128xf32>
    %9 = tpu.matmul %8, %7, %cst_8 {dimension_numbers = #tpu.dot_dimension_numbers<[1], [1], [0], [0], [0, 0, 1, 0], [], []>} : vector<1x128xf32>, vector<128x128xf32>, vector<1x128xf32> -> vector<1x128xf32>
    %c0_9 = arith.constant 0 : index
    %10 = memref.load %arg5[%c0_9] : memref<1xf32, #tpu.memory_space<smem>>
    %11 = vector.broadcast %10 : f32 to vector<1x128xf32>
    %12 = arith.addf %9, %11 : vector<1x128xf32>
    %c0_10 = arith.constant 0 : index
    %c0_11 = arith.constant 0 : index
    %13 = vector.load %arg6[%c0_10, %c0_11] : memref<1x128xf32, #tpu.memory_space<vmem>>, vector<1x128xf32>
    tpu.vector_store %arg6[%c0_10, %c0_11], %12 {strides = array<i32>} : memref<1x128xf32, #tpu.memory_space<vmem>>, vector<1x128xf32>,
    return
  }
  func.func @transform_0(%arg0: i32) -> (i32, i32) {
    %c0_i32 = arith.constant 0 : i32
    %c0_i32_0 = arith.constant 0 : i32
    return %arg0, %c0_i32 : i32, i32
  }
  func.func @transform_1(%arg0: i32) -> (i32, i32) {
    %c0_i32 = arith.constant 0 : i32
    %c0_i32_0 = arith.constant 0 : i32
    %c0_i32_1 = arith.constant 0 : i32
    return %c0_i32, %c0_i32_0 : i32, i32
  }
  func.func @transform_2(%arg0: i32) -> (i32, i32) {
    %c0_i32 = arith.constant 0 : i32
    %c0_i32_0 = arith.constant 0 : i32
    %c0_i32_1 = arith.constant 0 : i32
    return %c0_i32, %c0_i32_0 : i32, i32
  }
  func.func @transform_3(%arg0: i32) -> (i32, i32) {
    %c0_i32 = arith.constant 0 : i32
    %c0_i32_0 = arith.constant 0 : i32
    %c0_i32_1 = arith.constant 0 : i32
    return %c0_i32, %c0_i32_0 : i32, i32
  }
  func.func @transform_4(%arg0: i32) -> i32 {
    %c0_i32 = arith.constant 0 : i32
    %c0_i32_0 = arith.constant 0 : i32
    return %c0_i32 : i32
  }
  func.func @transform_5(%arg0: i32) -> (i32, i32) {
    %c0_i32 = arith.constant 0 : i32
    %c0_i32_0 = arith.constant 0 : i32
    return %c0_i32, %arg0 : i32, i32
  }
}

</mosaic_0001>

<bundles_post_ra>
// kernel: tpu_custom_call.1
= control target key start
LH: loop header
LB: loop body
LE: loop exit
PB: predicated region body
PF: predicated region fallthrough
CT: control target
= control target key end

     0   :  { %11 = vsyncpa [#allocation4], 0  ;;  %s717_s0 = inlined_call_operand.hbm [shape: f32[8,32], index: 0, kind: input, shape index: {}]   ;;  %s718_s1 = inlined_call_operand.hbm [shape: f32[32,128], index: 1, kind: input, shape index: {}]   ;;  %s719_s2 = inlined_call_operand.vmem [shape: f32[1,128], index: 2, kind: input, shape index: {}]   ;;  %s720_s3 = inlined_call_operand.vmem [shape: f32[1,128], index: 3, kind: input, shape index: {}]   ;;  %s721_s4 = inlined_call_operand.<no memory space> [shape: f32[1], index: 4, kind: input, shape index: {}]   ;;  %s722_s5 = inlined_call_operand.hbm [shape: f32[1,128], index: 5, kind: output, shape index: {}]  }
   0x1   :  { %12 = vsyncpa [#allocation7], 0 }
   0x2   :  { %13 = vsyncpa [#allocation5], 0 }
   0x3   :  { %18 = vsyncadd [#allocation4], 1920  ;;  %s610_s18 = smov [#allocation3]   ;;  %s538_s22 = scalar_lea.hbm %s717_s0, 128 }
   0x4   :  { %s19_s19 = sshll.u32 %s610_s18, 4  ;;  %p539_p0 = scmp.ne.s32.totalorder %s717_s0, %s538_s22  ;;  %s20_s19 = int_to_ptr.vmem [resolvable:$true] %s19_s19 }
   0x5   :  { %p542_p1 = scmp.lt.u32.totalorder %s538_s22, %s717_s0 }
   0x7   :  { %p544_p2 = pnand %p542_p1, %p539_p0 }
   0x9   :  { %547 = shalt.err (!%p544_p2)
}
   0xa   :  { %s548_s27 = scalar_lea.vmem %s20_s19, 128  ;;  %s552_s28 = scalar_lea.vmem %s20_s19, 2048 }
   0xb   :  { %p549_p3 = scmp.ne.s32.totalorder %s20_s19, %s548_s27  ;;  %p553_p4 = scmp.lt.s32.totalorder %s20_s19, %s20_s19 }
   0xc   :  { %p554_p5 = scmp.lt.s32.totalorder %s552_s28, %s548_s27 }
   0xe   :  { %p555_p6 = por %p554_p5, %p553_p4 }
  0x10   :  { %p556_p7 = pnand %p555_p6, %p549_p3 }
  0x12   :  { %559 = shalt.err (!%p556_p7)
}
  0x13   :  { %s611_s29 = smov 128   ;;  %s612_s30 = smov 8  }
  0x14   :  { %25 = dma.hbm_to_vmem [thread:$0]  %s717_s0, 128, %s20_s19, [#allocation4], %s611_s29, %s611_s29, %s612_s30  }
  0x15   :  { %s613_s8 = smov [#allocation6]   ;;  %s560_s12 = scalar_lea.hbm %s718_s1, 512 }
  0x16   :  { %s31_s9 = sshll.u32 %s613_s8, 4  ;;  %p561_p8 = scmp.ne.s32.totalorder %s718_s1, %s560_s12  ;;  %s32_s9 = int_to_ptr.vmem [resolvable:$true] %s31_s9 }
  0x17   :  { %p564_p9 = scmp.lt.u32.totalorder %s560_s12, %s718_s1 }
  0x19   :  { %p566_p10 = pnand %p564_p9, %p561_p8 }
  0x1b   :  { %569 = shalt.err (!%p566_p10)
}
  0x1c   :  { %s570_s17 = scalar_lea.vmem %s32_s9, 512  ;;  %p575_p12 = scmp.lt.s32.totalorder %s32_s9, %s32_s9 }
  0x1d   :  { %p571_p11 = scmp.ne.s32.totalorder %s32_s9, %s570_s17  ;;  %p576_p13 = scmp.lt.s32.totalorder %s570_s17, %s570_s17 }
  0x1f   :  { %p577_p0 = por %p576_p13, %p575_p12 }
  0x21   :  { %p578_p1 = pnand %p577_p0, %p571_p11 }
  0x23   :  { %581 = shalt.err (!%p578_p1)
}
  0x24   :  { %37 = dma.hbm_to_vmem [thread:$0]  %s718_s1, 512, %s32_s9, [#allocation7], %s611_s29, %s611_s29, %s612_s30  }
  0x25   :  { %604 = dma.done.wait [#allocation4], 2048  }
  0x26   :  { %605 = vsyncadd [#allocation4], 4294965248 }
  0x27   :  { %606 = dma.done.wait [#allocation7], 512  }
  0x28   :  { %607 = vsyncadd [#allocation7], 4294966784  ;;  %vm77_vm0 = vcmask 261120   ;;  %v66_v0 = vld [vmem:[#allocation6] sm:$0xff]  ;;  %v67_v1 = vld [vmem:[#allocation6 + $0x8] sm:$0xff]  ;;  %v614_v22 = vmov 0.0|0.0  }
  0x29   :  { %v68_v2 = vld [vmem:[#allocation6 + $0x10] sm:$0xff]  ;;  %v498_v3 = vpack.c.bf16 %v67_v1, %v66_v0  ;;  %v69_v4 = vld [vmem:[#allocation6 + $0x18] sm:$0xff]  ;;  %v50_v5 = vld [vmem:[#allocation3] sm:$0xff]  ;;  %506 = vmatprep.subr.bf16.mxu1 %v614_v22  ;;  %vm615_vm1 = vmmov 0   ;;  %v616_v23 = vmov 0.0   ;;  %s617_s23 = smov [#allocation8]  }
  0x2a   :  { %v502_v6 = vpack.c.bf16 %v69_v4, %v68_v2  ;;  %439 = vmatprep.mubr.msk.f32.mxu0 %vm77_vm0, %v50_v5  ;;  %v51_v7 = vld [vmem:[#allocation3 + $0x8] sm:$0xff]  ;;  %v52_v8 = vld [vmem:[#allocation3 + $0x10] sm:$0xff]  ;;  %v53_v9 = vld [vmem:[#allocation3 + $0x18] sm:$0xff]  ;;  %495 = vmatprep.mubr.msk.f32.mxu1 %vm615_vm1, %v616_v23  ;;  %s367_s24 = sshll.u32 %s617_s23, 4  ;;  %s368_s24 = int_to_ptr.vmem [resolvable:$true] %s367_s24 }
  0x2b   :  { %499 = vmatprep.subr.bf16.mxu0 %v498_v3  ;;  %v54_v10 = vld [vmem:[#allocation3 + $0x20] sm:$0xff]  ;;  %v55_v11 = vld [vmem:[#allocation3 + $0x28] sm:$0xff]  ;;  %v56_v12 = vld [vmem:[#allocation3 + $0x30] sm:$0xff]  ;;  %s582_s25 = scalar_lea.vmem %s368_s24, 16  ;;  %s586_s26 = scalar_lea.vmem %s368_s24, 32 }
  0x2c   :  { %501 = vmatpush3.bf16.msra.mxu0 %v498_v3  ;;  %v57_v13 = vld [vmem:[#allocation3 + $0x38] sm:$0xff]  ;;  %v58_v14 = vld [vmem:[#allocation3 + $0x40] sm:$0xff]  ;;  %v59_v15 = vld [vmem:[#allocation3 + $0x48] sm:$0xff]  ;;  %p583_p2 = scmp.ne.s32.totalorder %s368_s24, %s582_s25  ;;  %p587_p3 = scmp.lt.s32.totalorder %s368_s24, %s368_s24 }
  0x2d   :  { %503 = vmatprep.subr.bf16.mxu0 %v502_v6  ;;  %v60_v16 = vld [vmem:[#allocation3 + $0x50] sm:$0xff]  ;;  %v61_v17 = vld [vmem:[#allocation3 + $0x58] sm:$0xff]  ;;  %v62_v18 = vld [vmem:[#allocation3 + $0x60] sm:$0xff]  ;;  %p588_p4 = scmp.lt.s32.totalorder %s586_s26, %s582_s25 }
  0x2e   :  { %v63_v19 = vld [vmem:[#allocation3 + $0x68] sm:$0xff]  ;;  %v64_v20 = vld [vmem:[#allocation3 + $0x70] sm:$0xff]  ;;  %v65_v21 = vld [vmem:[#allocation3 + $0x78] sm:$0xff] }
  0x2f   :  { %v377_v24 = vld [vmem:[%s719_s2] ss:$0 sm:$0xff]  ;;  %p589_p5 = por %p588_p4, %p587_p3 }
  0x30   :  { %505 = vmatpush3.bf16.msra.mxu0 %v502_v6 }
  0x31   :  { %p590_p6 = pnand %p589_p5, %p583_p2 }
  0x33   :  { %440 = vmatmul.mubr.msk.f32.vlgmr.msra.gmra.mrb[0].mxu0 %vm77_vm0, %v51_v7 }
  0x34   :  { %442 = vmatprep.mubr.msk.f32.mxu0 %vm77_vm0, %v52_v8 }
  0x37   :  { %443 = vmatmul.mubr.msk.f32.gmra.mrb[2].mxu0 %vm77_vm0, %v53_v9 }
  0x38   :  { %445 = vmatprep.mubr.msk.f32.mxu0 %vm77_vm0, %v54_v10 }
  0x3b   :  { %446 = vmatmul.mubr.msk.f32.gmra.mrb[4].mxu0 %vm77_vm0, %v55_v11 }
  0x3c   :  { %448 = vmatprep.mubr.msk.f32.mxu0 %vm77_vm0, %v56_v12 }
  0x3f   :  { %449 = vmatmul.mubr.msk.f32.gmra.mrb[6].mxu0 %vm77_vm0, %v57_v13 }
  0x40   :  { %451 = vmatprep.mubr.msk.f32.mxu0 %vm77_vm0, %v58_v14 }
  0x43   :  { %452 = vmatmul.mubr.msk.f32.gmra.mrb[8].mxu0 %vm77_vm0, %v59_v15 }
  0x44   :  { %454 = vmatprep.mubr.msk.f32.mxu0 %vm77_vm0, %v60_v16 }
  0x47   :  { %455 = vmatmul.mubr.msk.f32.gmra.mrb[10].mxu0 %vm77_vm0, %v61_v17  ;;  %v287_v17 = vld [vmem:[%s720_s3] sm:$0x1] }
  0x48   :  { %457 = vmatprep.mubr.msk.f32.mxu0 %vm77_vm0, %v62_v18  ;;  %v289_v18 = vstv %s721_s4 }
  0x4b   :  { %458 = vmatmul.mubr.msk.f32.gmra.mrb[12].mxu0 %vm77_vm0, %v63_v19 }
  0x4c   :  { %460 = vmatprep.mubr.msk.f32.mxu0 %vm77_vm0, %v64_v20 }
  0x4f   :  { %461 = vmatmul.mubr.msk.f32.gmra.mrb[14].mxu0 %vm77_vm0, %v65_v21 }
 0x106   :  { %v441_v25 = vpop.f32.mrb[0].mxu0 }
 0x107   :  { %v198_v26 = vadd.f32 %v441_v25, %v377_v24  ;;  %v192_v27 = vpop.f32.mrb[1].mxu0 }
 0x108   :  { %v193_v28 = vadd.f32 %v377_v24, %v192_v27 }
 0x109   :  { %v272_v29 = vmax.f32 %v198_v26, 0.0 }
 0x10a   :  { %v271_v30 = vmax.f32 %v193_v28, 0.0  ;;  %v444_v31 = vpop.f32.mrb[2].mxu0 }
 0x10b   :  { %v208_v32 = vadd.f32 %v444_v31, %v377_v24  ;;  %v202_v33 = vpop.f32.mrb[3].mxu0 }
 0x10c   :  { %v203_v34 = vadd.f32 %v377_v24, %v202_v33  ;;  %v507_v35 = vpack.c.bf16 %v272_v29, %v271_v30 }
 0x10d   :  { %v274_v36 = vmax.f32 %v208_v32, 0.0 }
 0x10e   :  { %v273_v37 = vmax.f32 %v203_v34, 0.0  ;;  %508 = vmatpush3.bf16.xpose.msra.mxu1 %v507_v35  ;;  %v447_v38 = vpop.f32.mrb[4].mxu0 }
 0x10f   :  { %v218_v39 = vadd.f32 %v447_v38, %v377_v24  ;;  %509 = vmatprep.subr.bf16.mxu1 %v614_v22  ;;  %v212_v40 = vpop.f32.mrb[5].mxu0 }
 0x110   :  { %v510_v41 = vpack.c.bf16 %v274_v36, %v273_v37  ;;  %v213_v42 = vadd.f32 %v377_v24, %v212_v40 }
 0x111   :  { %v276_v43 = vmax.f32 %v218_v39, 0.0 }
 0x112   :  { %v275_v44 = vmax.f32 %v213_v42, 0.0  ;;  %v450_v45 = vpop.f32.mrb[6].mxu0 }
 0x113   :  { %v228_v46 = vadd.f32 %v450_v45, %v377_v24  ;;  %v222_v47 = vpop.f32.mrb[7].mxu0 }
 0x114   :  { %v513_v48 = vpack.c.bf16 %v276_v43, %v275_v44  ;;  %v223_v49 = vadd.f32 %v377_v24, %v222_v47 }
 0x115   :  { %v278_v50 = vmax.f32 %v228_v46, 0.0 }
 0x116   :  { %511 = vmatpush3.bf16.xpose.msra.mxu1 %v510_v41  ;;  %v277_v51 = vmax.f32 %v223_v49, 0.0  ;;  %v453_v52 = vpop.f32.mrb[8].mxu0 }
 0x117   :  { %512 = vmatprep.subr.bf16.mxu1 %v614_v22  ;;  %v238_v53 = vadd.f32 %v453_v52, %v377_v24  ;;  %v232_v54 = vpop.f32.mrb[9].mxu0 }
 0x118   :  { %v516_v55 = vpack.c.bf16 %v278_v50, %v277_v51  ;;  %v233_v56 = vadd.f32 %v377_v24, %v232_v54 }
 0x119   :  { %v280_v57 = vmax.f32 %v238_v53, 0.0 }
 0x11a   :  { %v279_v58 = vmax.f32 %v233_v56, 0.0  ;;  %v456_v59 = vpop.f32.mrb[10].mxu0 }
 0x11b   :  { %v248_v60 = vadd.f32 %v456_v59, %v377_v24  ;;  %v242_v61 = vpop.f32.mrb[11].mxu0 }
 0x11c   :  { %v519_v62 = vpack.c.bf16 %v280_v57, %v279_v58  ;;  %v243_v63 = vadd.f32 %v377_v24, %v242_v61 }
 0x11d   :  { %v282_v0 = vmax.f32 %v248_v60, 0.0 }
 0x11e   :  { %514 = vmatpush3.bf16.xpose.msra.mxu1 %v513_v48  ;;  %v281_v1 = vmax.f32 %v243_v63, 0.0  ;;  %v459_v2 = vpop.f32.mrb[12].mxu0 }
 0x11f   :  { %515 = vmatprep.subr.bf16.mxu1 %v614_v22  ;;  %v258_v3 = vadd.f32 %v459_v2, %v377_v24  ;;  %v252_v4 = vpop.f32.mrb[13].mxu0 }
 0x120   :  { %v522_v5 = vpack.c.bf16 %v282_v0, %v281_v1  ;;  %v253_v6 = vadd.f32 %v377_v24, %v252_v4 }
 0x121   :  { %v284_v7 = vmax.f32 %v258_v3, 0.0 }
 0x122   :  { %v283_v8 = vmax.f32 %v253_v6, 0.0  ;;  %v462_v9 = vpop.f32.mrb[14].mxu0 }
 0x123   :  { %v268_v10 = vadd.f32 %v462_v9, %v377_v24  ;;  %v262_v11 = vpop.f32.mrb[15].mxu0 }
 0x124   :  { %v525_v12 = vpack.c.bf16 %v284_v7, %v283_v8  ;;  %v263_v13 = vadd.f32 %v377_v24, %v262_v11 }
 0x125   :  { %v286_v14 = vmax.f32 %v268_v10, 0.0 }
 0x126   :  { %517 = vmatpush3.bf16.xpose.msra.mxu1 %v516_v55  ;;  %v285_v15 = vmax.f32 %v263_v13, 0.0 }
 0x127   :  { %518 = vmatprep.subr.bf16.mxu1 %v614_v22 }
 0x128   :  { %v528_v16 = vpack.c.bf16 %v286_v14, %v285_v15 }
 0x12e   :  { %520 = vmatpush3.bf16.xpose.msra.mxu1 %v519_v62 }
 0x12f   :  { %521 = vmatprep.subr.bf16.mxu1 %v614_v22 }
 0x136   :  { %523 = vmatpush3.bf16.xpose.msra.mxu1 %v522_v5 }
 0x137   :  { %524 = vmatprep.subr.bf16.mxu1 %v614_v22 }
 0x13e   :  { %526 = vmatpush3.bf16.xpose.msra.mxu1 %v525_v12 }
 0x13f   :  { %527 = vmatprep.subr.bf16.mxu1 %v614_v22 }
 0x146   :  { %529 = vmatpush3.bf16.xpose.msra.mxu1 %v528_v16 }
 0x14d   :  { %496 = vmatmul.mubr.f32.vlgmr.msra.gmra.mrb[0].mxu1 %v287_v17 }
 0x220   :  { %v356_v19 = vpop.f32.mrb[0].mxu1 }
 0x221   :  { %v357_v20 = vadd.f32 %v356_v19, %v289_v18  ;;  %v497_v21 = vpop.f32.mrb[1].mxu1 }
 0x223   :  { %360 = vst [vmem:[#allocation8] sm:$0x1] %v357_v20 }
 0x224   :  { %593 = shalt.err (!%p590_p6)
}
 0x225   :  { %s594_s28 = scalar_lea.hbm %s722_s5, 16 }
 0x226   :  { %p595_p7 = scmp.ne.s32.totalorder %s722_s5, %s594_s28  ;;  %p598_p8 = scmp.lt.u32.totalorder %s594_s28, %s722_s5 }
 0x228   :  { %p600_p9 = pnand %p598_p8, %p595_p7 }
 0x22a   :  { %603 = shalt.err (!%p600_p9)
}
 0x22b   :  { %370 = dma.vmem_to_hbm [thread:$0]  %s368_s24, 16, %s722_s5, [#allocation5]  }
 0x22c   :  { %608 = dma.done.wait [#allocation5], 16  }
 0x22d   :  { %609 = vsyncadd [#allocation5], 4294967280 }
 0x22e   :  { %374 = vsyncpa [#allocation4], 1 }
 0x22f   :  { %375 = vsyncpa [#allocation7], 1 }
 0x230   :  { %376 = vsyncpa [#allocation5], 1 }

</bundles_post_ra>
